<compile_context>
chip_gen: v6e
topology: v6e:2x2x1
jax: 0.10.0
libtpu: 0.0.40
codegen_flags: <defaults>
</compile_context>

<pallas_src>
import functools
import math

import jax
import jax.numpy as jnp
from jax.experimental import pallas as pl
from jax.experimental.pallas import tpu as pltpu


def _round_up(x, m):
    return ((x + m - 1) // m) * m


# ---------------------------------------------------------------------------
# Pallas kernel: one batch-tile through every layer of the MLP
# ---------------------------------------------------------------------------
def _fused_mlp_kernel(x_ref, w_ref, b_ref, o_ref, *, activations):
    """x_ref: [tm, P] f32, w_ref: [L, P, P] bf16 (already [K, N]), b_ref: [L, 1, P] f32."""
    h = x_ref[...]                                            # [tm, P] f32
    for l, act in enumerate(activations):                     # static, small L
        y = jnp.dot(h.astype(jnp.bfloat16), w_ref[l],
                    preferred_element_type=jnp.float32)       # MXU, f32 accumulate
        y = y + b_ref[l]                                      # [1, P] broadcast (VPU)
        if act == "relu":
            y = jnp.maximum(y, 0.0)
        elif act == "tanh":
            y = jnp.tanh(y)                                   # EUP
        h = y                                                 # stays on-chip
    o_ref[...] = h.astype(o_ref.dtype)


def _fused_mlp_pallas(x_pad, w_stacked, b_stacked, activations, tm):
    m_pad, p = x_pad.shape
    n_layers = w_stacked.shape[0]
    kernel = functools.partial(_fused_mlp_kernel, activations=tuple(activations))
    return pl.pallas_call(
        kernel,
        out_shape=jax.ShapeDtypeStruct((m_pad, p), jnp.float32),
        grid=(m_pad // tm,),
        in_specs=[
            pl.BlockSpec((tm, p), lambda i: (i, 0)),                 # batch tile
            pl.BlockSpec((n_layers, p, p), lambda i: (0, 0, 0)),     # all weights
            pl.BlockSpec((n_layers, 1, p), lambda i: (0, 0, 0)),     # all biases
        ],
        out_specs=pl.BlockSpec((tm, p), lambda i: (i, 0)),
        compiler_params=pltpu.CompilerParams(
            dimension_semantics=("parallel",),   # batch tiles are independent
        ),
    )(x_pad, w_stacked, b_stacked)


# ---------------------------------------------------------------------------
# Jitted wrapper: pad -> fused kernel -> un-pad
# ---------------------------------------------------------------------------
@functools.partial(jax.jit, static_argnames=("activations", "out_features"))
def _mlp_forward(x, weights, biases, activations, out_features):
    m, d_in = x.shape
    # Common lane-dense padded width for every layer (multiple of 128).
    p = _round_up(max([d_in] + [int(w.shape[0]) for w in weights]), 128)
    if m <= 256:
        tm = _round_up(m, 8)
        m_pad = tm
    else:
        tm = 256
        m_pad = _round_up(m, tm)

    x_pad = jnp.zeros((m_pad, p), jnp.float32).at[:m, :d_in].set(
        x.astype(jnp.float32))

    w_slabs, b_slabs = [], []
    for w, b in zip(weights, biases):
        n, k = w.shape                                  # PyTorch layout [out, in]
        w_t = jnp.zeros((p, p), jnp.float32).at[:k, :n].set(w.T)  # pre-transposed [K, N]
        w_slabs.append(w_t.astype(jnp.bfloat16))
        b_slabs.append(jnp.zeros((1, p), jnp.float32).at[0, :n].set(b))
    w_stacked = jnp.stack(w_slabs, axis=0)              # [L, P, P] bf16
    b_stacked = jnp.stack(b_slabs, axis=0)              # [L, 1, P] f32

    y_pad = _fused_mlp_pallas(x_pad, w_stacked, b_stacked, activations, tm)
    return y_pad[:m, :out_features]


# ---------------------------------------------------------------------------
# Module / MLP mirrors of the PyTorch mini-framework (forward only)
# ---------------------------------------------------------------------------
class LinearModule:
    name = "Linear"

    def __init__(self, in_features, out_features, key, activation=None):
        bound = 1.0 / math.sqrt(in_features)
        kw, kb = jax.random.split(key)
        self.weight = jax.random.uniform(
            kw, (out_features, in_features), jnp.float32, -bound, bound)
        self.bias = jax.random.uniform(
            kb, (out_features,), jnp.float32, -bound, bound)
        self.activation = activation  # fused into the Pallas kernel

    def forward(self, x):
        # Standalone (single-layer) path uses the same fused kernel machinery.
        return _mlp_forward(x, (self.weight,), (self.bias,),
                            (self.activation,), int(self.weight.shape[0]))

    def param(self):
        return [(self.weight, None), (self.bias, None)]


class MLP:
    """Sequential container — forward chains the children (same semantics as the
    PyTorch MLP), but executes the whole chain as ONE fused Pallas kernel."""

    def __init__(self, *args):
        self.sequential_modules = list(args)

    def __call__(self, x):
        self.forward(x)
        return self.output

    def forward(self, x):
        self.input = x
        mods = self.sequential_modules
        weights = tuple(m.weight for m in mods)
        biases = tuple(m.bias for m in mods)
        activations = tuple(getattr(m, "activation", None) for m in mods)
        self.output = _mlp_forward(x, weights, biases, activations,
                                   int(mods[-1].weight.shape[0]))
        return self.output

    def add(self, *args):
        self.sequential_modules.extend(args)

    def param(self):
        params = []
        for module in self.sequential_modules:
            params.extend(module.param())
        return params

    # TODO(synk): backward / zero_grad are training-time paths, not part of the
    # forward kernel; not implemented here.


# ---------------------------------------------------------------------------
# Pure-JAX reference (same bf16-matmul / f32-accumulate numerics as the kernel)
# ---------------------------------------------------------------------------
def _ref_forward(x, mods):
    out = x.astype(jnp.float32)
    for m in mods:
        out = jnp.dot(out.astype(jnp.bfloat16), m.weight.T.astype(jnp.bfloat16),
                      preferred_element_type=jnp.float32) + m.bias
        if m.activation == "relu":
            out = jnp.maximum(out, 0.0)
        elif m.activation == "tanh":
            out = jnp.tanh(out)
    return out


if __name__ == "__main__":
    key = jax.random.PRNGKey(0)
    k_in, k1, k2, k3 = jax.random.split(key, 4)

    batch, d_in, d_hidden, d_out = 8, 32, 64, 16
    x = jax.random.normal(k_in, (batch, d_in), jnp.float32)

    mlp = MLP(
        LinearModule(d_in, d_hidden, k1, activation="relu"),
        LinearModule(d_hidden, d_hidden, k2, activation="tanh"),
        LinearModule(d_hidden, d_out, k3, activation=None),
    )

    y = mlp(x)
    y = jax.block_until_ready(y)

    y_ref = _ref_forward(x, mlp.sequential_modules)
    assert y.shape == (batch, d_out), y.shape
    assert jnp.allclose(y, y_ref, atol=1e-3, rtol=1e-3), "mismatch vs reference"

    print("KERNEL_OK")
</pallas_src>

<mosaic_0001>
module attributes {stable_mosaic.version = 11 : i64} {
  func.func @_fused_mlp_kernel(%arg0: i32, %arg1: memref<8x128xf32, #tpu.memory_space<vmem>>, %arg2: memref<3x128x128xbf16, #tpu.memory_space<vmem>>, %arg3: memref<3x1x128xf32, #tpu.memory_space<vmem>>, %arg4: memref<8x128xf32, #tpu.memory_space<vmem>>) attributes {dimension_semantics = [#tpu.dimension_semantics<parallel>], iteration_bounds = array<i64: 1>, scalar_prefetch = 0 : i64, scratch_operands = 0 : i64, tpu.core_type = #tpu.core_type<tc>, window_params = [{transform_indices = @transform_0, window_bounds = array<i64: 8, 128>}, {pipeline_mode = #tpu.pipeline_mode<synchronous>, transform_indices = @transform_1, window_bounds = array<i64: 3, 128, 128>}, {pipeline_mode = #tpu.pipeline_mode<synchronous>, transform_indices = @transform_2, window_bounds = array<i64: 3, 1, 128>}, {transform_indices = @transform_3, window_bounds = array<i64: 8, 128>}]} {
    %c0 = arith.constant 0 : index
    %c0_0 = arith.constant 0 : index
    %0 = vector.load %arg1[%c0, %c0_0] : memref<8x128xf32, #tpu.memory_space<vmem>>, vector<8x128xf32>
    %1 = arith.truncf %0 : vector<8x128xf32> to vector<8x128xbf16>
    %c0_1 = arith.constant 0 : index
    %c0_2 = arith.constant 0 : index
    %c0_3 = arith.constant 0 : index
    %2 = vector.load %arg2[%c0_1, %c0_2, %c0_3] : memref<3x128x128xbf16, #tpu.memory_space<vmem>>, vector<1x128x128xbf16>
    %3 = vector.shape_cast %2 : vector<1x128x128xbf16> to vector<128x128xbf16>
    %cst = arith.constant dense<0.000000e+00> : vector<8x128xf32>
    %4 = tpu.matmul %1, %3, %cst {dimension_numbers = #tpu.dot_dimension_numbers<[1], [0], [0], [1], [0, 0, 1, 1], [], []>} : vector<8x128xbf16>, vector<128x128xbf16>, vector<8x128xf32> -> vector<8x128xf32>
    %c0_4 = arith.constant 0 : index
    %c0_5 = arith.constant 0 : index
    %c0_6 = arith.constant 0 : index
    %5 = vector.load %arg3[%c0_4, %c0_5, %c0_6] : memref<3x1x128xf32, #tpu.memory_space<vmem>>, vector<1x1x128xf32>
    %6 = vector.shape_cast %5 : vector<1x1x128xf32> to vector<1x128xf32>
    %7 = vector.broadcast %6 : vector<1x128xf32> to vector<8x128xf32>
    %8 = arith.addf %4, %7 : vector<8x128xf32>
    %cst_7 = arith.constant 0.000000e+00 : f32
    %9 = vector.broadcast %cst_7 : f32 to vector<8x128xf32>
    %10 = arith.maximumf %8, %9 : vector<8x128xf32>
    %11 = arith.truncf %10 : vector<8x128xf32> to vector<8x128xbf16>
    %c1 = arith.constant 1 : index
    %c0_8 = arith.constant 0 : index
    %c0_9 = arith.constant 0 : index
    %12 = vector.load %arg2[%c1, %c0_8, %c0_9] : memref<3x128x128xbf16, #tpu.memory_space<vmem>>, vector<1x128x128xbf16>
    %13 = vector.shape_cast %12 : vector<1x128x128xbf16> to vector<128x128xbf16>
    %cst_10 = arith.constant dense<0.000000e+00> : vector<8x128xf32>
    %14 = tpu.matmul %11, %13, %cst_10 {dimension_numbers = #tpu.dot_dimension_numbers<[1], [0], [0], [1], [0, 0, 1, 1], [], []>} : vector<8x128xbf16>, vector<128x128xbf16>, vector<8x128xf32> -> vector<8x128xf32>
    %c1_11 = arith.constant 1 : index
    %c0_12 = arith.constant 0 : index
    %c0_13 = arith.constant 0 : index
    %15 = vector.load %arg3[%c1_11, %c0_12, %c0_13] : memref<3x1x128xf32, #tpu.memory_space<vmem>>, vector<1x1x128xf32>
    %16 = vector.shape_cast %15 : vector<1x1x128xf32> to vector<1x128xf32>
    %17 = vector.broadcast %16 : vector<1x128xf32> to vector<8x128xf32>
    %18 = arith.addf %14, %17 : vector<8x128xf32>
    %19 = math.tanh %18 : vector<8x128xf32>
    %20 = arith.truncf %19 : vector<8x128xf32> to vector<8x128xbf16>
    %c2 = arith.constant 2 : index
    %c0_14 = arith.constant 0 : index
    %c0_15 = arith.constant 0 : index
    %21 = vector.load %arg2[%c2, %c0_14, %c0_15] : memref<3x128x128xbf16, #tpu.memory_space<vmem>>, vector<1x128x128xbf16>
    %22 = vector.shape_cast %21 : vector<1x128x128xbf16> to vector<128x128xbf16>
    %cst_16 = arith.constant dense<0.000000e+00> : vector<8x128xf32>
    %23 = tpu.matmul %20, %22, %cst_16 {dimension_numbers = #tpu.dot_dimension_numbers<[1], [0], [0], [1], [0, 0, 1, 1], [], []>} : vector<8x128xbf16>, vector<128x128xbf16>, vector<8x128xf32> -> vector<8x128xf32>
    %c2_17 = arith.constant 2 : index
    %c0_18 = arith.constant 0 : index
    %c0_19 = arith.constant 0 : index
    %24 = vector.load %arg3[%c2_17, %c0_18, %c0_19] : memref<3x1x128xf32, #tpu.memory_space<vmem>>, vector<1x1x128xf32>
    %25 = vector.shape_cast %24 : vector<1x1x128xf32> to vector<1x128xf32>
    %26 = vector.broadcast %25 : vector<1x128xf32> to vector<8x128xf32>
    %27 = arith.addf %23, %26 : vector<8x128xf32>
    %c0_20 = arith.constant 0 : index
    %c0_21 = arith.constant 0 : index
    %28 = vector.load %arg4[%c0_20, %c0_21] : memref<8x128xf32, #tpu.memory_space<vmem>>, vector<8x128xf32>
    tpu.vector_store %arg4[%c0_20, %c0_21], %27 {strides = array<i32>} : memref<8x128xf32, #tpu.memory_space<vmem>>, vector<8x128xf32>,
    return
  }
  func.func @transform_0(%arg0: i32) -> (i32, i32) {
    %c0_i32 = arith.constant 0 : i32
    %c0_i32_0 = arith.constant 0 : i32
    return %arg0, %c0_i32 : i32, i32
  }
  func.func @transform_1(%arg0: i32) -> (i32, i32, i32) {
    %c0_i32 = arith.constant 0 : i32
    %c0_i32_0 = arith.constant 0 : i32
    %c0_i32_1 = arith.constant 0 : i32
    %c0_i32_2 = arith.constant 0 : i32
    return %c0_i32, %c0_i32_0, %c0_i32_1 : i32, i32, i32
  }
  func.func @transform_2(%arg0: i32) -> (i32, i32, i32) {
    %c0_i32 = arith.constant 0 : i32
    %c0_i32_0 = arith.constant 0 : i32
    %c0_i32_1 = arith.constant 0 : i32
    %c0_i32_2 = arith.constant 0 : i32
    return %c0_i32, %c0_i32_0, %c0_i32_1 : i32, i32, i32
  }
  func.func @transform_3(%arg0: i32) -> (i32, i32) {
    %c0_i32 = arith.constant 0 : i32
    %c0_i32_0 = arith.constant 0 : i32
    return %arg0, %c0_i32 : i32, i32
  }
}

</mosaic_0001>

<bundles_post_ra>
// kernel: _mlp_forward.1
= control target key start
LH: loop header
LB: loop body
LE: loop exit
PB: predicated region body
PF: predicated region fallthrough
CT: control target
= control target key end

     0   :  { %v573_v1 = vmov 0.0   ;;  %vm574_vm0 = vmmov 0   ;;  %s713_s0 = inlined_call_operand.vmem [shape: f32[8,128], index: 0, kind: input, shape index: {}]   ;;  %s714_s1 = inlined_call_operand.vmem [shape: bf16[3,128,128], index: 1, kind: input, shape index: {}]   ;;  %s715_s2 = inlined_call_operand.vmem [shape: f32[3,1,128], index: 2, kind: input, shape index: {}]   ;;  %s716_s3 = inlined_call_operand.hbm [shape: f32[8,128], index: 3, kind: output, shape index: {}]  }
   0x1   :  { %v525_v0 = vld [vmem:[%s714_s1 + $0x38] sm:$0xff]   ;;  %462 = vmatprep.subr.bf16.mxu0 %v573_v1  ;;  %482 = vmatprep.subr.bf16.mxu1 %v573_v1  ;;  %v526_v2 = vld [vmem:[%s714_s1 + $0x30] sm:$0xff]   ;;  %v527_v3 = vld [vmem:[%s714_s1 + $0x28] sm:$0xff]  }
   0x2   :  { %463 = vmatpush3.bf16.msra.mxu0 %v525_v0  ;;  %478 = vmatprep.mubr.msk.bf16.mxu0 %vm574_vm0, %v573_v1  ;;  %v533_v4 = vld [vmem:[%s714_s1 + $0x78] sm:$0xff]   ;;  %v528_v5 = vld [vmem:[%s714_s1 + $0x20] sm:$0xff]   ;;  %v534_v6 = vld [vmem:[%s714_s1 + $0x70] sm:$0xff]  }
   0x3   :  { %464 = vmatprep.subr.bf16.mxu0 %v573_v1  ;;  %498 = vmatprep.mubr.msk.bf16.mxu1 %vm574_vm0, %v573_v1  ;;  %v529_v7 = vld [vmem:[%s714_s1 + $0x18] sm:$0xff]   ;;  %v535_v8 = vld [vmem:[%s714_s1 + $0x68] sm:$0xff]   ;;  %v530_v9 = vld [vmem:[%s714_s1 + $0x10] sm:$0xff]  }
   0x4   :  { %483 = vmatpush3.bf16.msra.mxu1 %v533_v4  ;;  %v536_v10 = vld [vmem:[%s714_s1 + $0x60] sm:$0xff]  }
   0x5   :  { %484 = vmatprep.subr.bf16.mxu1 %v573_v1 }
   0x6   :  { %465 = vmatpush3.bf16.msra.mxu0 %v526_v2 }
   0x7   :  { %466 = vmatprep.subr.bf16.mxu0 %v573_v1 }
   0x8   :  { %485 = vmatpush3.bf16.msra.mxu1 %v534_v6 }
   0x9   :  { %486 = vmatprep.subr.bf16.mxu1 %v573_v1 }
   0xa   :  { %467 = vmatpush3.bf16.msra.mxu0 %v527_v3 }
   0xb   :  { %468 = vmatprep.subr.bf16.mxu0 %v573_v1 }
   0xc   :  { %487 = vmatpush3.bf16.msra.mxu1 %v535_v8 }
   0xd   :  { %488 = vmatprep.subr.bf16.mxu1 %v573_v1 }
   0xe   :  { %469 = vmatpush3.bf16.msra.mxu0 %v528_v5 }
   0xf   :  { %470 = vmatprep.subr.bf16.mxu0 %v573_v1 }
  0x12   :  { %471 = vmatpush3.bf16.msra.mxu0 %v529_v7 }
  0x13   :  { %472 = vmatprep.subr.bf16.mxu0 %v573_v1 }
  0x14   :  { %8 = vsyncpa [#allocation3], 0  ;;  %v531_v11 = vld [vmem:[%s714_s1 + $0x8] sm:$0xff]   ;;  %489 = vmatpush3.bf16.msra.mxu1 %v536_v10  ;;  %v537_v12 = vld [vmem:[%s714_s1 + $0x58] sm:$0xff]   ;;  %s575_s13 = smov [#allocation2]  }
  0x15   :  { %490 = vmatprep.subr.bf16.mxu1 %v573_v1  ;;  %v532_v13 = vld [vmem:[%s714_s1] sm:$0xff]   ;;  %v538_v15 = vld [vmem:[%s714_s1 + $0x50] sm:$0xff]   ;;  %v539_v17 = vld [vmem:[%s714_s1 + $0x48] sm:$0xff]  }
  0x16   :  { %473 = vmatpush3.bf16.msra.mxu0 %v530_v9  ;;  %v16_v14 = vld [vmem:[%s713_s0] sm:$0xff]  ;;  %v541_v19 = vld [vmem:[%s714_s1 + $0xb8] sm:$0xff]   ;;  %v542_v20 = vld [vmem:[%s714_s1 + $0xb0] sm:$0xff]  }
  0x17   :  { %474 = vmatprep.subr.bf16.mxu0 %v573_v1  ;;  %v17_v16 = vpack.c.bf16 %v16_v14, %v16_v14  ;;  %v540_v18 = vld [vmem:[%s714_s1 + $0x40] sm:$0xff]   ;;  %v543_v21 = vld [vmem:[%s714_s1 + $0xa8] sm:$0xff]   ;;  %v545_v31 = vld [vmem:[%s714_s1 + $0x98] sm:$0xff]  }
  0x18   :  { %491 = vmatpush3.bf16.msra.mxu1 %v537_v12  ;;  %v374_v22 = vld [vmem:[%s715_s2] ss:$0 sm:$0xff]  ;;  %v546_v32 = vld [vmem:[%s714_s1 + $0x90] sm:$0xff]   ;;  %v547_v33 = vld [vmem:[%s714_s1 + $0x88] sm:$0xff]  }
  0x19   :  { %492 = vmatprep.subr.bf16.mxu1 %v573_v1  ;;  %v544_v30 = vld [vmem:[%s714_s1 + $0xa0] sm:$0xff]  }
  0x1a   :  { %475 = vmatpush3.bf16.msra.mxu0 %v531_v11  ;;  %v548_v34 = vld [vmem:[%s714_s1 + $0x80] sm:$0xff]   ;;  %s366_s1 = sshll.u32 %s575_s13, 4  ;;  %s367_s1 = int_to_ptr.vmem [resolvable:$true] %s366_s1 }
  0x1b   :  { %476 = vmatprep.subr.bf16.mxu0 %v573_v1  ;;  %v400_v35 = vld [vmem:[%s715_s2 + $0x1] ss:$0 sm:$0xff]  ;;  %v426_v43 = vld [vmem:[%s715_s2 + $0x2] ss:$0 sm:$0xff]  ;;  %s551_s14 = scalar_lea.vmem %s367_s1, 128  ;;  %p556_p1 = scmp.lt.s32.totalorder %s367_s1, %s367_s1 }
  0x1c   :  { %493 = vmatpush3.bf16.msra.mxu1 %v538_v15  ;;  %p552_p0 = scmp.ne.s32.totalorder %s367_s1, %s551_s14  ;;  %p557_p2 = scmp.lt.s32.totalorder %s551_s14, %s551_s14 }
  0x1d   :  { %494 = vmatprep.subr.bf16.mxu1 %v573_v1 }
  0x1e   :  { %477 = vmatpush3.bf16.msra.mxu0 %v532_v13  ;;  %p558_p3 = por %p557_p2, %p556_p1 }
  0x1f   :  { %502 = vmatprep.subr.bf16.mxu0 %v573_v1 }
  0x20   :  { %495 = vmatpush3.bf16.msra.mxu1 %v539_v17  ;;  %p559_p4 = pnand %p558_p3, %p552_p0 }
  0x21   :  { %479 = vmatmul.mubr.bf16.vlgmr.msra.gmra.mxu0 %v17_v16  ;;  %496 = vmatprep.subr.bf16.mxu1 %v573_v1 }
  0x22   :  { %518 = vmatprep.mubr.msk.bf16.mxu0 %vm574_vm0, %v573_v1  ;;  %503 = vmatpush3.bf16.msra.mxu0 %v541_v19 }
  0x23   :  { %504 = vmatprep.subr.bf16.mxu0 %v573_v1 }
  0x24   :  { %497 = vmatpush3.bf16.msra.mxu1 %v540_v18 }
  0x26   :  { %505 = vmatpush3.bf16.msra.mxu0 %v542_v20 }
  0x27   :  { %506 = vmatprep.subr.bf16.mxu0 %v573_v1 }
  0x2a   :  { %507 = vmatpush3.bf16.msra.mxu0 %v543_v21 }
  0x2b   :  { %508 = vmatprep.subr.bf16.mxu0 %v573_v1 }
  0x2e   :  { %509 = vmatpush3.bf16.msra.mxu0 %v544_v30 }
  0x2f   :  { %510 = vmatprep.subr.bf16.mxu0 %v573_v1 }
  0x32   :  { %511 = vmatpush3.bf16.msra.mxu0 %v545_v31 }
  0x33   :  { %512 = vmatprep.subr.bf16.mxu0 %v573_v1 }
  0x36   :  { %513 = vmatpush3.bf16.msra.mxu0 %v546_v32 }
  0x37   :  { %514 = vmatprep.subr.bf16.mxu0 %v573_v1 }
  0x3a   :  { %515 = vmatpush3.bf16.msra.mxu0 %v547_v33 }
  0x3b   :  { %516 = vmatprep.subr.bf16.mxu0 %v573_v1 }
  0x3e   :  { %517 = vmatpush3.bf16.msra.mxu0 %v548_v34 }
  0xe1   :  { %v123_v23 = vpop.f32.mrf.mxu0 }
  0xe2   :  { %v124_v24 = vadd.f32 %v374_v22, %v123_v23 }
  0xe3   :  { %v480_v25 = vpop.f32.mrf.mxu0 }
  0xe4   :  { %v129_v26 = vmax.f32 %v124_v24, 0.0 }
  0xe5   :  { %v126_v27 = vpop.f32.mrf.mxu0 }
  0xe6   :  { %v130_v28 = vpack.c.bf16 %v129_v26, %v129_v26 }
  0xe7   :  { %v481_v29 = vpop.f32.mrf.mxu0 }
  0xe8   :  { %499 = vmatmul.mubr.bf16.vlgmr.msra.gmra.mxu1 %v130_v28 }
 0x1a8   :  { %v238_v36 = vpop.f32.mrf.mxu1 }
 0x1a9   :  { %v239_v37 = vadd.f32 %v400_v35, %v238_v36 }
 0x1aa   :  { %v500_v38 = vpop.f32.mrf.mxu1 }
 0x1ab   :  { %549 = vtanh.f32 %v239_v37 }
 0x1ac   :  { %v241_v39 = vpop.f32.mrf.mxu1 }
 0x1ae   :  { %v501_v40 = vpop.f32.mrf.mxu1 }
 0x1b8   :  { %v550_v41 = vpop.eup %549 }
 0x1b9   :  { %v245_v42 = vpack.c.bf16 %v550_v41, %v550_v41 }
 0x1bb   :  { %519 = vmatmul.mubr.bf16.vlgmr.msra.gmra.mxu0 %v245_v42 }
 0x27b   :  { %v353_v44 = vpop.f32.mrf.mxu0 }
 0x27c   :  { %v354_v45 = vadd.f32 %v426_v43, %v353_v44 }
 0x27d   :  { %v520_v46 = vpop.f32.mrf.mxu0 }
 0x27e   :  { %359 = vst [vmem:[#allocation2] sm:$0xff] %v354_v45 }
 0x27f   :  { %v356_v47 = vpop.f32.mrf.mxu0 }
 0x280   :  { %562 = shalt.err (!%p559_p4)
}
 0x281   :  { %369 = dma.vmem_to_hbm [thread:$0]  %s367_s1, 128, %s716_s3, [#allocation3]   ;;  %v521_v48 = vpop.f32.mrf.mxu0 }
 0x282   :  { %571 = dma.done.wait [#allocation3], 128  }
 0x283   :  { %572 = vsyncadd [#allocation3], 4294967168 }
 0x284   :  { %373 = vsyncpa [#allocation3], 1 }

</bundles_post_ra>
